<compile_context>
chip_gen: v7x
topology: tpu7x:2x2x1
jax: 0.10.0
libtpu: 0.0.40
codegen_flags: <defaults>
</compile_context>

<pallas_src>
import jax
import jax.numpy as jnp
from jax.experimental import pallas as pl
from jax.experimental.pallas import tpu as pltpu


# ----------------------------- configuration -------------------------------
PARAM_DIM = 11                       # source/target param  (b, 11, 1)
KP_DIM = 26                          # keypoints            (b, 26, 1)
COND_DIM = PARAM_DIM + KP_DIM        # 37
LATENT_DIM = 8                       # latent z for each sub-VAE decoder
HIDDEN = 64                          # decoder hidden width
NUM_POINTS = 16                      # modelB outputs NUM_POINTS 3-D points
PT_OUT_DIM = NUM_POINTS * 3          # 48

LANE = 128                           # TPU lane width
XA_DIM = LATENT_DIM + COND_DIM       # 45  : [zA | sp - tp | skp]
XBS_DIM = LATENT_DIM + PARAM_DIM     # 19  : [zB | tp]  (static part of x_b)
PT_LANE_OFF = KP_DIM                 # pt output steered into lanes 26..73
N_W = 7                              # packed weight tiles
N_B = 8                              # bias slab rows (6 used, padded to 8)


# ------------------------------- kernel ------------------------------------
def ep_pkvae_kernel(xa_ref, xbs_ref, w_ref, b_ref, out_ref):
    f32 = jnp.float32

    def bias(i):
        return b_ref[i:i + 1, :]                 # static (1, 128) view

    # ---- modelA.sample : 3-layer MLP decoder -> keypoints (lanes 0..25) ----
    h = jnp.dot(xa_ref[...], w_ref[0], preferred_element_type=f32) + bias(0)
    h = jnp.maximum(h, 0.0)
    h = jnp.dot(h, w_ref[1], preferred_element_type=f32) + bias(1)
    h = jnp.maximum(h, 0.0)
    kp = jnp.dot(h, w_ref[2], preferred_element_type=f32) + bias(2)
    # kp: lanes [0, 26) valid, lanes [26, 128) exactly zero (padded W/b).

    # ---- modelB.sample : split first layer (no in-kernel concat) ----
    # x_b = [zB | tp | kp]  ==>  x_b @ wB1 = xbs @ wB1[:19] + kp @ wB1[19:]
    g = (jnp.dot(xbs_ref[...], w_ref[3], preferred_element_type=f32)
         + jnp.dot(kp, w_ref[4], preferred_element_type=f32)
         + bias(3))
    g = jnp.maximum(g, 0.0)
    g = jnp.dot(g, w_ref[5], preferred_element_type=f32) + bias(4)
    g = jnp.maximum(g, 0.0)
    pt = jnp.dot(g, w_ref[6], preferred_element_type=f32) + bias(5)
    # pt: lanes [26, 74) valid (wB3/bB3 packed at column offset 26), rest zero.

    # kp and pt occupy disjoint lanes -> lane-dense combined store.
    out_ref[...] = (kp + pt).astype(out_ref.dtype)


# --------------------------- parameter packing ------------------------------
def _pad_mat(w, row_off=0, col_off=0):
    r, c = w.shape
    return (jnp.zeros((LANE, LANE), jnp.float32)
            .at[row_off:row_off + r, col_off:col_off + c].set(w))


def _pad_vec(v, off=0):
    v = jnp.reshape(v, (-1,)).astype(jnp.float32)
    return jnp.zeros((LANE,), jnp.float32).at[off:off + v.shape[0]].set(v)


def pack_params(paramsA, paramsB):
    """Pack the 12 weight/bias arrays into one weight slab and one bias slab."""
    wB1 = paramsB["w1"]                                  # (45, 64): rows [zB|tp|kp]
    w_slab = jnp.stack([
        _pad_mat(paramsA["w1"]),                         # 0: (45,64)  xa -> h
        _pad_mat(paramsA["w2"]),                         # 1: (64,64)
        _pad_mat(paramsA["w3"]),                         # 2: (64,26)  -> kp lanes 0..25
        _pad_mat(wB1[:XBS_DIM, :]),                      # 3: (19,64)  [zB|tp] rows
        _pad_mat(wB1[XBS_DIM:, :]),                      # 4: (26,64)  kp rows
        _pad_mat(paramsB["w2"]),                         # 5: (64,64)
        _pad_mat(paramsB["w3"], col_off=PT_LANE_OFF),    # 6: (64,48)  -> lanes 26..73
    ])                                                   # (7, 128, 128)

    b_slab = jnp.zeros((N_B, LANE), jnp.float32)
    b_slab = b_slab.at[0].set(_pad_vec(paramsA["b1"]))
    b_slab = b_slab.at[1].set(_pad_vec(paramsA["b2"]))
    b_slab = b_slab.at[2].set(_pad_vec(paramsA["b3"]))
    b_slab = b_slab.at[3].set(_pad_vec(paramsB["b1"]))
    b_slab = b_slab.at[4].set(_pad_vec(paramsB["b2"]))
    b_slab = b_slab.at[5].set(_pad_vec(paramsB["b3"], off=PT_LANE_OFF))
    return w_slab, b_slab


# ------------------------------- wrapper ------------------------------------
def make_decoder_params(key, in_dim, hidden, out_dim):
    k1, k2, k3 = jax.random.split(key, 3)
    scale = 0.1
    return dict(
        w1=jax.random.normal(k1, (in_dim, hidden), jnp.float32) * scale,
        b1=jnp.zeros((1, hidden), jnp.float32),
        w2=jax.random.normal(k2, (hidden, hidden), jnp.float32) * scale,
        b2=jnp.zeros((1, hidden), jnp.float32),
        w3=jax.random.normal(k3, (hidden, out_dim), jnp.float32) * scale,
        b3=jnp.zeros((1, out_dim), jnp.float32),
    )


def _round_up(x, m):
    return ((x + m - 1) // m) * m


def ep_pkvae_forward(source_param, target_param, source_keypoint,
                     zA, zB, paramsA, paramsB):
    """
    source_param:    (b, 11, 1)  float32
    target_param:    (b, 11, 1)  float32
    source_keypoint: (b, 26, 1)  float32
    returns (target_keypoint_pred (b,26,1), target_point_pred (b,NUM_POINTS,3))
    """
    b = source_param.shape[0]
    sp = source_param[..., 0]            # (b, 11)
    tp = target_param[..., 0]            # (b, 11)
    skp = source_keypoint[..., 0]        # (b, 26)

    # Hoisted input assembly (everything not depending on in-kernel kp).
    xa = jnp.concatenate([zA, sp - tp, skp], axis=1)     # (b, 45)
    xbs = jnp.concatenate([zB, tp], axis=1)              # (b, 19)

    tb = min(LANE, _round_up(b, 8))                      # batch tile (mult of 8)
    b_pad = _round_up(b, tb)

    xa_pad = jnp.zeros((b_pad, LANE), jnp.float32).at[:b, :XA_DIM].set(xa)
    xbs_pad = jnp.zeros((b_pad, LANE), jnp.float32).at[:b, :XBS_DIM].set(xbs)

    w_slab, b_slab = pack_params(paramsA, paramsB)

    out = pl.pallas_call(
        ep_pkvae_kernel,
        out_shape=jax.ShapeDtypeStruct((b_pad, LANE), jnp.float32),
        grid=(b_pad // tb,),
        in_specs=[
            pl.BlockSpec((tb, LANE), lambda i: (i, 0)),            # xa
            pl.BlockSpec((tb, LANE), lambda i: (i, 0)),            # xbs
            pl.BlockSpec((N_W, LANE, LANE), lambda i: (0, 0, 0)),  # weight slab
            pl.BlockSpec((N_B, LANE), lambda i: (0, 0)),           # bias slab
        ],
        out_specs=pl.BlockSpec((tb, LANE), lambda i: (i, 0)),
        compiler_params=pltpu.CompilerParams(
            dimension_semantics=("parallel",)),
    )(xa_pad, xbs_pad, w_slab, b_slab)

    target_keypoint_pred = out[:b, :KP_DIM][..., None]                     # (b,26,1)
    target_point_pred = out[:b, KP_DIM:KP_DIM + PT_OUT_DIM].reshape(
        b, NUM_POINTS, 3)                                                  # (b,P,3)
    return target_keypoint_pred, target_point_pred


# ------------------------------ reference ------------------------------------
def reference_forward(sp, tp, skp, zA, zB, pA, pB):
    hi = jax.lax.Precision.HIGHEST
    cond_a = jnp.concatenate([sp - tp, skp], axis=1)
    xa = jnp.concatenate([zA, cond_a], axis=1)
    h = jnp.maximum(jnp.dot(xa, pA["w1"], precision=hi) + pA["b1"], 0.0)
    h = jnp.maximum(jnp.dot(h, pA["w2"], precision=hi) + pA["b2"], 0.0)
    kp = jnp.dot(h, pA["w3"], precision=hi) + pA["b3"]
    cond_b = jnp.concatenate([tp, kp], axis=1)
    xb = jnp.concatenate([zB, cond_b], axis=1)
    g = jnp.maximum(jnp.dot(xb, pB["w1"], precision=hi) + pB["b1"], 0.0)
    g = jnp.maximum(jnp.dot(g, pB["w2"], precision=hi) + pB["b2"], 0.0)
    pt = jnp.dot(g, pB["w3"], precision=hi) + pB["b3"]
    return kp, pt


# --------------------------------- main --------------------------------------
if __name__ == "__main__":
    key = jax.random.PRNGKey(0)
    k_sp, k_tp, k_kp, k_zA, k_zB, k_pA, k_pB = jax.random.split(key, 7)

    batch = 4
    source_param = jax.random.normal(k_sp, (batch, PARAM_DIM, 1), jnp.float32)
    target_param = jax.random.normal(k_tp, (batch, PARAM_DIM, 1), jnp.float32)
    source_keypoint = jax.random.normal(k_kp, (batch, KP_DIM, 1), jnp.float32)

    # Deterministic latent draws standing in for the VAE sampling step.
    zA = jax.random.normal(k_zA, (batch, LATENT_DIM), jnp.float32)
    zB = jax.random.normal(k_zB, (batch, LATENT_DIM), jnp.float32)

    # Deterministic synthetic decoder weights for modelA / modelB.
    paramsA = make_decoder_params(k_pA, LATENT_DIM + COND_DIM, HIDDEN, KP_DIM)
    paramsB = make_decoder_params(k_pB, LATENT_DIM + COND_DIM, HIDDEN, PT_OUT_DIM)

    kp_pred, pt_pred = jax.jit(ep_pkvae_forward)(
        source_param, target_param, source_keypoint, zA, zB, paramsA, paramsB)
    jax.block_until_ready((kp_pred, pt_pred))

    assert kp_pred.shape == (batch, KP_DIM, 1)
    assert pt_pred.shape == (batch, NUM_POINTS, 3)
    assert jnp.all(jnp.isfinite(kp_pred)) and jnp.all(jnp.isfinite(pt_pred))

    # Numerical check against a plain-JAX reference of the same decoders.
    kp_ref, pt_ref = reference_forward(
        source_param[..., 0], target_param[..., 0], source_keypoint[..., 0],
        zA, zB, paramsA, paramsB)
    assert float(jnp.max(jnp.abs(kp_pred[..., 0] - kp_ref))) < 1e-2
    assert float(jnp.max(jnp.abs(pt_pred.reshape(batch, -1) - pt_ref))) < 1e-2

    # TODO(synk): modelA/modelB definitions are not provided in the source repo;
    # their `.sample()` is realized here as deterministic conditional MLP decoders.
    print("KERNEL_OK")
</pallas_src>

<mosaic_0001>
module attributes {stable_mosaic.version = 11 : i64} {
  func.func @ep_pkvae_kernel(%arg0: i32, %arg1: memref<8x128xf32, #tpu.memory_space<vmem>>, %arg2: memref<8x128xf32, #tpu.memory_space<vmem>>, %arg3: memref<7x128x128xf32, #tpu.memory_space<vmem>>, %arg4: memref<8x128xf32, #tpu.memory_space<vmem>>, %arg5: memref<8x128xf32, #tpu.memory_space<vmem>>) attributes {dimension_semantics = [#tpu.dimension_semantics<parallel>], iteration_bounds = array<i64: 1>, scalar_prefetch = 0 : i64, scratch_operands = 0 : i64, tpu.core_type = #tpu.core_type<tc>, window_params = [{transform_indices = @transform_0, window_bounds = array<i64: 8, 128>}, {transform_indices = @transform_1, window_bounds = array<i64: 8, 128>}, {pipeline_mode = #tpu.pipeline_mode<synchronous>, transform_indices = @transform_2, window_bounds = array<i64: 7, 128, 128>}, {pipeline_mode = #tpu.pipeline_mode<synchronous>, transform_indices = @transform_3, window_bounds = array<i64: 8, 128>}, {transform_indices = @transform_4, window_bounds = array<i64: 8, 128>}]} {
    %c0 = arith.constant 0 : index
    %c0_0 = arith.constant 0 : index
    %0 = vector.load %arg1[%c0, %c0_0] : memref<8x128xf32, #tpu.memory_space<vmem>>, vector<8x128xf32>
    %c0_1 = arith.constant 0 : index
    %c0_2 = arith.constant 0 : index
    %c0_3 = arith.constant 0 : index
    %1 = vector.load %arg3[%c0_1, %c0_2, %c0_3] : memref<7x128x128xf32, #tpu.memory_space<vmem>>, vector<1x128x128xf32>
    %2 = vector.shape_cast %1 : vector<1x128x128xf32> to vector<128x128xf32>
    %cst = arith.constant dense<0.000000e+00> : vector<8x128xf32>
    %3 = tpu.matmul %0, %2, %cst {dimension_numbers = #tpu.dot_dimension_numbers<[1], [0], [0], [1], [0, 0, 1, 1], [], []>} : vector<8x128xf32>, vector<128x128xf32>, vector<8x128xf32> -> vector<8x128xf32>
    %c0_4 = arith.constant 0 : index
    %c0_5 = arith.constant 0 : index
    %4 = vector.load %arg4[%c0_4, %c0_5] : memref<8x128xf32, #tpu.memory_space<vmem>>, vector<1x128xf32>
    %5 = vector.broadcast %4 : vector<1x128xf32> to vector<8x128xf32>
    %6 = arith.addf %3, %5 : vector<8x128xf32>
    %cst_6 = arith.constant 0.000000e+00 : f32
    %7 = vector.broadcast %cst_6 : f32 to vector<8x128xf32>
    %8 = arith.maximumf %6, %7 : vector<8x128xf32>
    %c1 = arith.constant 1 : index
    %c0_7 = arith.constant 0 : index
    %c0_8 = arith.constant 0 : index
    %9 = vector.load %arg3[%c1, %c0_7, %c0_8] : memref<7x128x128xf32, #tpu.memory_space<vmem>>, vector<1x128x128xf32>
    %10 = vector.shape_cast %9 : vector<1x128x128xf32> to vector<128x128xf32>
    %cst_9 = arith.constant dense<0.000000e+00> : vector<8x128xf32>
    %11 = tpu.matmul %8, %10, %cst_9 {dimension_numbers = #tpu.dot_dimension_numbers<[1], [0], [0], [1], [0, 0, 1, 1], [], []>} : vector<8x128xf32>, vector<128x128xf32>, vector<8x128xf32> -> vector<8x128xf32>
    %c1_10 = arith.constant 1 : index
    %c0_11 = arith.constant 0 : index
    %12 = vector.load %arg4[%c1_10, %c0_11] : memref<8x128xf32, #tpu.memory_space<vmem>>, vector<1x128xf32>
    %13 = vector.broadcast %12 : vector<1x128xf32> to vector<8x128xf32>
    %14 = arith.addf %11, %13 : vector<8x128xf32>
    %cst_12 = arith.constant 0.000000e+00 : f32
    %15 = vector.broadcast %cst_12 : f32 to vector<8x128xf32>
    %16 = arith.maximumf %14, %15 : vector<8x128xf32>
    %c2 = arith.constant 2 : index
    %c0_13 = arith.constant 0 : index
    %c0_14 = arith.constant 0 : index
    %17 = vector.load %arg3[%c2, %c0_13, %c0_14] : memref<7x128x128xf32, #tpu.memory_space<vmem>>, vector<1x128x128xf32>
    %18 = vector.shape_cast %17 : vector<1x128x128xf32> to vector<128x128xf32>
    %cst_15 = arith.constant dense<0.000000e+00> : vector<8x128xf32>
    %19 = tpu.matmul %16, %18, %cst_15 {dimension_numbers = #tpu.dot_dimension_numbers<[1], [0], [0], [1], [0, 0, 1, 1], [], []>} : vector<8x128xf32>, vector<128x128xf32>, vector<8x128xf32> -> vector<8x128xf32>
    %c2_16 = arith.constant 2 : index
    %c0_17 = arith.constant 0 : index
    %20 = vector.load %arg4[%c2_16, %c0_17] : memref<8x128xf32, #tpu.memory_space<vmem>>, vector<1x128xf32>
    %21 = vector.broadcast %20 : vector<1x128xf32> to vector<8x128xf32>
    %22 = arith.addf %19, %21 : vector<8x128xf32>
    %c0_18 = arith.constant 0 : index
    %c0_19 = arith.constant 0 : index
    %23 = vector.load %arg2[%c0_18, %c0_19] : memref<8x128xf32, #tpu.memory_space<vmem>>, vector<8x128xf32>
    %c3 = arith.constant 3 : index
    %c0_20 = arith.constant 0 : index
    %c0_21 = arith.constant 0 : index
    %24 = vector.load %arg3[%c3, %c0_20, %c0_21] : memref<7x128x128xf32, #tpu.memory_space<vmem>>, vector<1x128x128xf32>
    %25 = vector.shape_cast %24 : vector<1x128x128xf32> to vector<128x128xf32>
    %cst_22 = arith.constant dense<0.000000e+00> : vector<8x128xf32>
    %26 = tpu.matmul %23, %25, %cst_22 {dimension_numbers = #tpu.dot_dimension_numbers<[1], [0], [0], [1], [0, 0, 1, 1], [], []>} : vector<8x128xf32>, vector<128x128xf32>, vector<8x128xf32> -> vector<8x128xf32>
    %c4 = arith.constant 4 : index
    %c0_23 = arith.constant 0 : index
    %c0_24 = arith.constant 0 : index
    %27 = vector.load %arg3[%c4, %c0_23, %c0_24] : memref<7x128x128xf32, #tpu.memory_space<vmem>>, vector<1x128x128xf32>
    %28 = vector.shape_cast %27 : vector<1x128x128xf32> to vector<128x128xf32>
    %cst_25 = arith.constant dense<0.000000e+00> : vector<8x128xf32>
    %29 = tpu.matmul %22, %28, %cst_25 {dimension_numbers = #tpu.dot_dimension_numbers<[1], [0], [0], [1], [0, 0, 1, 1], [], []>} : vector<8x128xf32>, vector<128x128xf32>, vector<8x128xf32> -> vector<8x128xf32>
    %30 = arith.addf %26, %29 : vector<8x128xf32>
    %c3_26 = arith.constant 3 : index
    %c0_27 = arith.constant 0 : index
    %31 = vector.load %arg4[%c3_26, %c0_27] : memref<8x128xf32, #tpu.memory_space<vmem>>, vector<1x128xf32>
    %32 = vector.broadcast %31 : vector<1x128xf32> to vector<8x128xf32>
    %33 = arith.addf %30, %32 : vector<8x128xf32>
    %cst_28 = arith.constant 0.000000e+00 : f32
    %34 = vector.broadcast %cst_28 : f32 to vector<8x128xf32>
    %35 = arith.maximumf %33, %34 : vector<8x128xf32>
    %c5 = arith.constant 5 : index
    %c0_29 = arith.constant 0 : index
    %c0_30 = arith.constant 0 : index
    %36 = vector.load %arg3[%c5, %c0_29, %c0_30] : memref<7x128x128xf32, #tpu.memory_space<vmem>>, vector<1x128x128xf32>
    %37 = vector.shape_cast %36 : vector<1x128x128xf32> to vector<128x128xf32>
    %cst_31 = arith.constant dense<0.000000e+00> : vector<8x128xf32>
    %38 = tpu.matmul %35, %37, %cst_31 {dimension_numbers = #tpu.dot_dimension_numbers<[1], [0], [0], [1], [0, 0, 1, 1], [], []>} : vector<8x128xf32>, vector<128x128xf32>, vector<8x128xf32> -> vector<8x128xf32>
    %c4_32 = arith.constant 4 : index
    %c0_33 = arith.constant 0 : index
    %39 = vector.load %arg4[%c4_32, %c0_33] : memref<8x128xf32, #tpu.memory_space<vmem>>, vector<1x128xf32>
    %40 = vector.broadcast %39 : vector<1x128xf32> to vector<8x128xf32>
    %41 = arith.addf %38, %40 : vector<8x128xf32>
    %cst_34 = arith.constant 0.000000e+00 : f32
    %42 = vector.broadcast %cst_34 : f32 to vector<8x128xf32>
    %43 = arith.maximumf %41, %42 : vector<8x128xf32>
    %c6 = arith.constant 6 : index
    %c0_35 = arith.constant 0 : index
    %c0_36 = arith.constant 0 : index
    %44 = vector.load %arg3[%c6, %c0_35, %c0_36] : memref<7x128x128xf32, #tpu.memory_space<vmem>>, vector<1x128x128xf32>
    %45 = vector.shape_cast %44 : vector<1x128x128xf32> to vector<128x128xf32>
    %cst_37 = arith.constant dense<0.000000e+00> : vector<8x128xf32>
    %46 = tpu.matmul %43, %45, %cst_37 {dimension_numbers = #tpu.dot_dimension_numbers<[1], [0], [0], [1], [0, 0, 1, 1], [], []>} : vector<8x128xf32>, vector<128x128xf32>, vector<8x128xf32> -> vector<8x128xf32>
    %c5_38 = arith.constant 5 : index
    %c0_39 = arith.constant 0 : index
    %47 = vector.load %arg4[%c5_38, %c0_39] : memref<8x128xf32, #tpu.memory_space<vmem>>, vector<1x128xf32>
    %48 = vector.broadcast %47 : vector<1x128xf32> to vector<8x128xf32>
    %49 = arith.addf %46, %48 : vector<8x128xf32>
    %50 = arith.addf %22, %49 : vector<8x128xf32>
    %c0_40 = arith.constant 0 : index
    %c0_41 = arith.constant 0 : index
    %51 = vector.load %arg5[%c0_40, %c0_41] : memref<8x128xf32, #tpu.memory_space<vmem>>, vector<8x128xf32>
    tpu.vector_store %arg5[%c0_40, %c0_41], %50 {strides = array<i32>} : memref<8x128xf32, #tpu.memory_space<vmem>>, vector<8x128xf32>,
    return
  }
  func.func @transform_0(%arg0: i32) -> (i32, i32) {
    %c0_i32 = arith.constant 0 : i32
    %c0_i32_0 = arith.constant 0 : i32
    return %arg0, %c0_i32 : i32, i32
  }
  func.func @transform_1(%arg0: i32) -> (i32, i32) {
    %c0_i32 = arith.constant 0 : i32
    %c0_i32_0 = arith.constant 0 : i32
    return %arg0, %c0_i32 : i32, i32
  }
  func.func @transform_2(%arg0: i32) -> (i32, i32, i32) {
    %c0_i32 = arith.constant 0 : i32
    %c0_i32_0 = arith.constant 0 : i32
    %c0_i32_1 = arith.constant 0 : i32
    %c0_i32_2 = arith.constant 0 : i32
    return %c0_i32, %c0_i32_0, %c0_i32_1 : i32, i32, i32
  }
  func.func @transform_3(%arg0: i32) -> (i32, i32) {
    %c0_i32 = arith.constant 0 : i32
    %c0_i32_0 = arith.constant 0 : i32
    %c0_i32_1 = arith.constant 0 : i32
    return %c0_i32, %c0_i32_0 : i32, i32
  }
  func.func @transform_4(%arg0: i32) -> (i32, i32) {
    %c0_i32 = arith.constant 0 : i32
    %c0_i32_0 = arith.constant 0 : i32
    return %arg0, %c0_i32 : i32, i32
  }
}

</mosaic_0001>

<bundles_post_ra>
// kernel: sub.1
= control target key start
LH: loop header
LB: loop body
LE: loop exit
PB: predicated region body
PF: predicated region fallthrough
CT: control target
= control target key end

     0   :  { %s34_s0 = inlined_call_operand.vmem [shape: f32[4,11], index: 0, kind: input, shape index: {}]   ;;  %s35_s1 = inlined_call_operand.vmem [shape: f32[4,11], index: 1, kind: input, shape index: {}]   ;;  %s36_s2 = inlined_call_operand.vmem [shape: f32[4,11], index: 2, kind: output, shape index: {}]  }
   0x1   :  { %v3_v0 = vld [vmem:[%s34_s0] sm:$0xf] }
   0x2   :  { %v4_v1 = vld [vmem:[%s35_s1] sm:$0xf] }
   0x3   :  { %v7_v2 = vsub.f32 %v3_v0, %v4_v1 }
   0x5   :  { %9 = vst [vmem:[%s36_s2] sm:$0xf] %v7_v2 }

// kernel: ep_pkvae_forward.1
= control target key start
LH: loop header
LB: loop body
LE: loop exit
PB: predicated region body
PF: predicated region fallthrough
CT: control target
= control target key end

     0   :  { %v1305_v0 = vmov 0.0|0.0   ;;  %vm1306_vm0 = vmmov 0   ;;  %v1307_v4 = vmov 0.0   ;;  %s1770_s2 = inlined_call_operand.vmem [shape: f32[7,128,128], index: 2, kind: input, shape index: {}]   ;;  %s1771_s0 = inlined_call_operand.vmem [shape: f32[8,128], index: 0, kind: input, shape index: {}]   ;;  %s1772_s3 = inlined_call_operand.vmem [shape: f32[8,128], index: 3, kind: input, shape index: {}]   ;;  %s1773_s1 = inlined_call_operand.vmem [shape: f32[8,128], index: 1, kind: input, shape index: {}]   ;;  %s1774_s4 = inlined_call_operand.vmem [shape: f32[8,128], index: 4, kind: output, shape index: {}]  }
   0x1   :  { %1134 = vmatprep.subr.bf16.mxu0 %v1305_v0  ;;  %v18_v1 = vld [vmem:[%s1770_s2] sm:$0xff]  ;;  %v19_v2 = vld [vmem:[%s1770_s2 + $0x8] sm:$0xff]  ;;  %v20_v3 = vld [vmem:[%s1770_s2 + $0x10] sm:$0xff]  ;;  %921 = vmatprep.mubr.msk.f32.mxu0 %vm1306_vm0, %v1307_v4 }
   0x2   :  { %v1135_v5 = vpack.c.bf16 %v19_v2, %v18_v1  ;;  %v21_v6 = vld [vmem:[%s1770_s2 + $0x18] sm:$0xff]  ;;  %1158 = vmatprep.subr.bf16.mxu1 %v1305_v0  ;;  %956 = vmatprep.mubr.msk.f32.mxu1 %vm1306_vm0, %v1307_v4  ;;  %v22_v8 = vld [vmem:[%s1770_s2 + $0x20] sm:$0xff]  ;;  %v23_v9 = vld [vmem:[%s1770_s2 + $0x28] sm:$0xff] }
   0x3   :  { %v1138_v7 = vpack.c.bf16 %v21_v6, %v20_v3  ;;  %v669_v10 = vld [vmem:[%s1770_s2 + $0x80] sm:$0xff]  ;;  %v670_v11 = vld [vmem:[%s1770_s2 + $0x88] sm:$0xff]  ;;  %v671_v12 = vld [vmem:[%s1770_s2 + $0x90] sm:$0xff]  ;;  %v1141_v14 = vpack.c.bf16 %v23_v9, %v22_v8 }
   0x4   :  { %1136 = vmatpush3.bf16.msra.mxu0 %v1135_v5  ;;  %v672_v13 = vld [vmem:[%s1770_s2 + $0x98] sm:$0xff]  ;;  %v1159_v15 = vpack.c.bf16 %v670_v11, %v669_v10  ;;  %v24_v16 = vld [vmem:[%s1770_s2 + $0x30] sm:$0xff]  ;;  %v673_v19 = vld [vmem:[%s1770_s2 + $0xa0] sm:$0xff] }
   0x5   :  { %1137 = vmatprep.subr.bf16.mxu0 %v1305_v0  ;;  %v25_v17 = vld [vmem:[%s1770_s2 + $0x38] sm:$0xff]  ;;  %v1162_v18 = vpack.c.bf16 %v672_v13, %v671_v12  ;;  %v674_v20 = vld [vmem:[%s1770_s2 + $0xa8] sm:$0xff]  ;;  %v26_v22 = vld [vmem:[%s1770_s2 + $0x40] sm:$0xff] }
   0x6   :  { %1160 = vmatpush3.bf16.msra.mxu1 %v1159_v15  ;;  %v1144_v21 = vpack.c.bf16 %v25_v17, %v24_v16  ;;  %v27_v23 = vld [vmem:[%s1770_s2 + $0x48] sm:$0xff]  ;;  %v1165_v24 = vpack.c.bf16 %v674_v20, %v673_v19  ;;  %v675_v25 = vld [vmem:[%s1770_s2 + $0xb0] sm:$0xff]  ;;  %v676_v26 = vld [vmem:[%s1770_s2 + $0xb8] sm:$0xff] }
   0x7   :  { %1161 = vmatprep.subr.bf16.mxu1 %v1305_v0  ;;  %v1147_v27 = vpack.c.bf16 %v27_v23, %v26_v22  ;;  %v28_v28 = vld [vmem:[%s1770_s2 + $0x50] sm:$0xff]  ;;  %v29_v29 = vld [vmem:[%s1770_s2 + $0x58] sm:$0xff]  ;;  %v1168_v30 = vpack.c.bf16 %v676_v26, %v675_v25  ;;  %v677_v31 = vld [vmem:[%s1770_s2 + $0xc0] sm:$0xff] }
   0x8   :  { %1139 = vmatpush3.bf16.msra.mxu0 %v1138_v7  ;;  %v678_v32 = vld [vmem:[%s1770_s2 + $0xc8] sm:$0xff]  ;;  %v1150_v33 = vpack.c.bf16 %v29_v29, %v28_v28  ;;  %v30_v34 = vld [vmem:[%s1770_s2 + $0x60] sm:$0xff]  ;;  %v679_v37 = vld [vmem:[%s1770_s2 + $0xd0] sm:$0xff] }
   0x9   :  { %1140 = vmatprep.subr.bf16.mxu0 %v1305_v0  ;;  %v31_v35 = vld [vmem:[%s1770_s2 + $0x68] sm:$0xff]  ;;  %v1171_v36 = vpack.c.bf16 %v678_v32, %v677_v31  ;;  %v680_v38 = vld [vmem:[%s1770_s2 + $0xd8] sm:$0xff]  ;;  %v32_v40 = vld [vmem:[%s1770_s2 + $0x70] sm:$0xff] }
   0xa   :  { %1163 = vmatpush3.bf16.msra.mxu1 %v1162_v18  ;;  %v1153_v39 = vpack.c.bf16 %v31_v35, %v30_v34  ;;  %v33_v41 = vld [vmem:[%s1770_s2 + $0x78] sm:$0xff]  ;;  %v1174_v42 = vpack.c.bf16 %v680_v38, %v679_v37  ;;  %v681_v43 = vld [vmem:[%s1770_s2 + $0xe0] sm:$0xff]  ;;  %v682_v44 = vld [vmem:[%s1770_s2 + $0xe8] sm:$0xff] }
   0xb   :  { %1164 = vmatprep.subr.bf16.mxu1 %v1305_v0  ;;  %v1156_v45 = vpack.c.bf16 %v33_v41, %v32_v40  ;;  %v1177_v46 = vpack.c.bf16 %v682_v44, %v681_v43  ;;  %v17_v47 = vld [vmem:[%s1771_s0] sm:$0xff]  ;;  %v683_v48 = vld [vmem:[%s1770_s2 + $0xf0] sm:$0xff]  ;;  %v684_v49 = vld [vmem:[%s1770_s2 + $0xf8] sm:$0xff] }
   0xc   :  { %1142 = vmatpush3.bf16.msra.mxu0 %v1141_v14  ;;  %v1180_v50 = vpack.c.bf16 %v684_v49, %v683_v48  ;;  %v686_v51 = vld [vmem:[%s1770_s2 + $0x100] sm:$0xff]  ;;  %v687_v52 = vld [vmem:[%s1770_s2 + $0x108] sm:$0xff]  ;;  %v688_v53 = vld [vmem:[%s1770_s2 + $0x110] sm:$0xff] }
   0xd   :  { %1143 = vmatprep.subr.bf16.mxu0 %v1305_v0  ;;  %v1183_v54 = vpack.c.bf16 %v687_v52, %v686_v51  ;;  %v689_v55 = vld [vmem:[%s1770_s2 + $0x118] sm:$0xff]  ;;  %v690_v57 = vld [vmem:[%s1770_s2 + $0x120] sm:$0xff]  ;;  %v691_v58 = vld [vmem:[%s1770_s2 + $0x128] sm:$0xff] }
   0xe   :  { %1166 = vmatpush3.bf16.msra.mxu1 %v1165_v24  ;;  %v1186_v56 = vpack.c.bf16 %v689_v55, %v688_v53  ;;  %v1189_v59 = vpack.c.bf16 %v691_v58, %v690_v57  ;;  %v692_v60 = vld [vmem:[%s1770_s2 + $0x130] sm:$0xff]  ;;  %v693_v61 = vld [vmem:[%s1770_s2 + $0x138] sm:$0xff]  ;;  %v694_v63 = vld [vmem:[%s1770_s2 + $0x140] sm:$0xff] }
   0xf   :  { %1167 = vmatprep.subr.bf16.mxu1 %v1305_v0  ;;  %v1192_v62 = vpack.c.bf16 %v693_v61, %v692_v60  ;;  %v695_v1 = vld [vmem:[%s1770_s2 + $0x148] sm:$0xff]  ;;  %v696_v3 = vld [vmem:[%s1770_s2 + $0x150] sm:$0xff]  ;;  %v697_v5 = vld [vmem:[%s1770_s2 + $0x158] sm:$0xff] }
  0x10   :  { %1145 = vmatpush3.bf16.msra.mxu0 %v1144_v21  ;;  %v1195_v2 = vpack.c.bf16 %v695_v1, %v694_v63  ;;  %v1198_v6 = vpack.c.bf16 %v697_v5, %v696_v3  ;;  %v698_v7 = vld [vmem:[%s1770_s2 + $0x160] sm:$0xff]  ;;  %v699_v8 = vld [vmem:[%s1770_s2 + $0x168] sm:$0xff]  ;;  %v700_v15 = vld [vmem:[%s1770_s2 + $0x170] sm:$0xff] }
  0x11   :  { %1146 = vmatprep.subr.bf16.mxu0 %v1305_v0  ;;  %v1201_v9 = vpack.c.bf16 %v699_v8, %v698_v7  ;;  %v668_v10 = vld [vmem:[%s1772_s3] ss:$0 sm:$0xff]  ;;  %v701_v16 = vld [vmem:[%s1770_s2 + $0x178] sm:$0xff]  ;;  %v720_v19 = vld [vmem:[%s1770_s2 + $0x208] sm:$0xff] }
  0x12   :  { %1169 = vmatpush3.bf16.msra.mxu1 %v1168_v30  ;;  %v1204_v17 = vpack.c.bf16 %v701_v16, %v700_v15  ;;  %v719_v18 = vld [vmem:[%s1770_s2 + $0x200] sm:$0xff]  ;;  %v721_v21 = vld [vmem:[%s1770_s2 + $0x210] sm:$0xff]  ;;  %v722_v22 = vld [vmem:[%s1770_s2 + $0x218] sm:$0xff] }
  0x13   :  { %1170 = vmatprep.subr.bf16.mxu1 %v1305_v0  ;;  %v1207_v20 = vpack.c.bf16 %v720_v19, %v719_v18  ;;  %v1210_v23 = vpack.c.bf16 %v722_v22, %v721_v21  ;;  %v723_v24 = vld [vmem:[%s1770_s2 + $0x220] sm:$0xff]  ;;  %v724_v25 = vld [vmem:[%s1770_s2 + $0x228] sm:$0xff]  ;;  %v726_v28 = vld [vmem:[%s1770_s2 + $0x238] sm:$0xff] }
  0x14   :  { %1148 = vmatpush3.bf16.msra.mxu0 %v1147_v27  ;;  %v1213_v26 = vpack.c.bf16 %v724_v25, %v723_v24  ;;  %v725_v27 = vld [vmem:[%s1770_s2 + $0x230] sm:$0xff]  ;;  %v727_v30 = vld [vmem:[%s1770_s2 + $0x240] sm:$0xff]  ;;  %v728_v31 = vld [vmem:[%s1770_s2 + $0x248] sm:$0xff] }
  0x15   :  { %1149 = vmatprep.subr.bf16.mxu0 %v1305_v0  ;;  %v1216_v29 = vpack.c.bf16 %v726_v28, %v725_v27  ;;  %v1219_v32 = vpack.c.bf16 %v728_v31, %v727_v30  ;;  %v730_v34 = vld [vmem:[%s1770_s2 + $0x258] sm:$0xff]  ;;  %v732_v37 = vld [vmem:[%s1770_s2 + $0x268] sm:$0xff]  ;;  %v703_v40 = vld [vmem:[%s1770_s2 + $0x180] sm:$0xff] }
  0x16   :  { %1172 = vmatpush3.bf16.msra.mxu1 %v1171_v36  ;;  %v731_v36 = vld [vmem:[%s1770_s2 + $0x260] sm:$0xff]  ;;  %v704_v41 = vld [vmem:[%s1770_s2 + $0x188] sm:$0xff]  ;;  %v706_v48 = vld [vmem:[%s1770_s2 + $0x198] sm:$0xff] }
  0x17   :  { %1173 = vmatprep.subr.bf16.mxu1 %v1305_v0  ;;  %v1225_v38 = vpack.c.bf16 %v732_v37, %v731_v36  ;;  %v708_v51 = vld [vmem:[%s1770_s2 + $0x1a8] sm:$0xff]  ;;  %v709_v53 = vld [vmem:[%s1770_s2 + $0x1b0] sm:$0xff]  ;;  %v714_v60 = vld [vmem:[%s1770_s2 + $0x1d8] sm:$0xff] }
  0x18   :  { %1151 = vmatpush3.bf16.msra.mxu0 %v1150_v33  ;;  %v729_v33 = vld [vmem:[%s1770_s2 + $0x250] sm:$0xff]  ;;  %v712_v57 = vld [vmem:[%s1770_s2 + $0x1c8] sm:$0xff]  ;;  %v718_v3 = vld [vmem:[%s1770_s2 + $0x1f8] sm:$0xff] }
  0x19   :  { %1152 = vmatprep.subr.bf16.mxu0 %v1305_v0  ;;  %v1222_v35 = vpack.c.bf16 %v730_v34, %v729_v33  ;;  %v716_v63 = vld [vmem:[%s1770_s2 + $0x1e8] sm:$0xff]  ;;  %v734_v7 = vld [vmem:[%s1770_s2 + $0x278] sm:$0xff]  ;;  %v744_v25 = vld [vmem:[%s1770_s2 + $0x2c0] sm:$0xff] }
  0x1a   :  { %1175 = vmatpush3.bf16.msra.mxu1 %v1174_v42  ;;  %v739_v18 = vld [vmem:[%s1770_s2 + $0x298] sm:$0xff]  ;;  %v741_v21 = vld [vmem:[%s1770_s2 + $0x2a8] sm:$0xff]  ;;  %v746_v28 = vld [vmem:[%s1770_s2 + $0x2d0] sm:$0xff] }
  0x1b   :  { %1176 = vmatprep.subr.bf16.mxu1 %v1305_v0  ;;  %v748_v31 = vld [vmem:[%s1770_s2 + $0x2e0] sm:$0xff]  ;;  %v750_v36 = vld [vmem:[%s1770_s2 + $0x2f0] sm:$0xff]  ;;  %v751_v37 = vld [vmem:[%s1770_s2 + $0x2f8] sm:$0xff] }
  0x1c   :  { %1154 = vmatpush3.bf16.msra.mxu0 %v1153_v39  ;;  %v685_v39 = vld [vmem:[%s1772_s3 + $0x1] ss:$0 sm:$0xff] }
  0x1d   :  { %1155 = vmatprep.subr.bf16.mxu0 %v1305_v0 }
  0x1e   :  { %1178 = vmatpush3.bf16.msra.mxu1 %v1177_v46 }
  0x1f   :  { %1179 = vmatprep.subr.bf16.mxu1 %v1305_v0 }
  0x20   :  { %1157 = vmatpush3.bf16.msra.mxu0 %v1156_v45  ;;  %v1231_v45 = vpack.c.bf16 %v704_v41, %v703_v40  ;;  %v754_v40 = vld [vmem:[%s1770_s2 + $0x308] sm:$0xff]  ;;  %v755_v41 = vld [vmem:[%s1770_s2 + $0x310] sm:$0xff] }
  0x21   :  { %1182 = vmatprep.subr.bf16.mxu0 %v1305_v0 }
  0x22   :  { %1181 = vmatpush3.bf16.msra.mxu1 %v1180_v50  ;;  %v707_v50 = vld [vmem:[%s1770_s2 + $0x1a0] sm:$0xff] }
  0x23   :  { %922 = vmatmul.mubr.f32.vlgmr.msra.gmra.mrb[0].mxu0 %v17_v47  ;;  %1206 = vmatprep.subr.bf16.mxu1 %v1305_v0  ;;  %v705_v47 = vld [vmem:[%s1770_s2 + $0x190] sm:$0xff]  ;;  %v1237_v52 = vpack.c.bf16 %v708_v51, %v707_v50  ;;  %v761_v51 = vld [vmem:[%s1770_s2 + $0x340] sm:$0xff] }
  0x24   :  { %991 = vmatprep.mubr.msk.f32.mxu0 %vm1306_vm0, %v1307_v4  ;;  %1184 = vmatpush3.bf16.msra.mxu0 %v1183_v54  ;;  %v1234_v49 = vpack.c.bf16 %v706_v48, %v705_v47  ;;  %v710_v54 = vld [vmem:[%s1770_s2 + $0x1b8] sm:$0xff]  ;;  %v759_v48 = vld [vmem:[%s1770_s2 + $0x330] sm:$0xff] }
  0x25   :  { %1185 = vmatprep.subr.bf16.mxu0 %v1305_v0  ;;  %v1240_v55 = vpack.c.bf16 %v710_v54, %v709_v53  ;;  %v763_v54 = vld [vmem:[%s1770_s2 + $0x350] sm:$0xff] }
  0x28   :  { %1187 = vmatpush3.bf16.msra.mxu0 %v1186_v56  ;;  %v711_v56 = vld [vmem:[%s1770_s2 + $0x1c0] sm:$0xff] }
  0x29   :  { %1188 = vmatprep.subr.bf16.mxu0 %v1305_v0  ;;  %v1243_v58 = vpack.c.bf16 %v712_v57, %v711_v56  ;;  %v765_v57 = vld [vmem:[%s1770_s2 + $0x360] sm:$0xff] }
  0x2c   :  { %1190 = vmatpush3.bf16.msra.mxu0 %v1189_v59  ;;  %v713_v59 = vld [vmem:[%s1770_s2 + $0x1d0] sm:$0xff] }
  0x2d   :  { %1191 = vmatprep.subr.bf16.mxu0 %v1305_v0  ;;  %v1246_v61 = vpack.c.bf16 %v714_v60, %v713_v59 }
  0x30   :  { %1193 = vmatpush3.bf16.msra.mxu0 %v1192_v62  ;;  %v715_v62 = vld [vmem:[%s1770_s2 + $0x1e0] sm:$0xff] }
  0x31   :  { %1194 = vmatprep.subr.bf16.mxu0 %v1305_v0  ;;  %v1249_v1 = vpack.c.bf16 %v716_v63, %v715_v62 }
  0x34   :  { %1196 = vmatpush3.bf16.msra.mxu0 %v1195_v2  ;;  %v717_v2 = vld [vmem:[%s1770_s2 + $0x1f0] sm:$0xff] }
  0x35   :  { %1197 = vmatprep.subr.bf16.mxu0 %v1305_v0  ;;  %v1252_v5 = vpack.c.bf16 %v718_v3, %v717_v2  ;;  %v767_v3 = vld [vmem:[%s1770_s2 + $0x370] sm:$0xff] }
  0x38   :  { %1199 = vmatpush3.bf16.msra.mxu0 %v1198_v6  ;;  %v733_v6 = vld [vmem:[%s1770_s2 + $0x270] sm:$0xff] }
  0x39   :  { %1200 = vmatprep.subr.bf16.mxu0 %v1305_v0  ;;  %v1228_v8 = vpack.c.bf16 %v734_v7, %v733_v6 }
  0x3c   :  { %1202 = vmatpush3.bf16.msra.mxu0 %v1201_v9  ;;  %v295_v9 = vld [vmem:[%s1773_s1] sm:$0xff] }
  0x3d   :  { %1203 = vmatprep.subr.bf16.mxu0 %v1305_v0 }
  0x40   :  { %1205 = vmatpush3.bf16.msra.mxu0 %v1204_v17  ;;  %v738_v17 = vld [vmem:[%s1770_s2 + $0x290] sm:$0xff] }
  0x41   :  { %1230 = vmatprep.subr.bf16.mxu0 %v1305_v0  ;;  %v1258_v19 = vpack.c.bf16 %v739_v18, %v738_v17 }
  0xf6   :  { %v105_v11 = vpop.f32.mrb[0].mxu0 }
  0xf7   :  { %v106_v12 = vadd.f32 %v668_v10, %v105_v11  ;;  %v923_v13 = vpop.f32.mrb[1].mxu0  ;;  %v736_v10 = vld [vmem:[%s1770_s2 + $0x280] sm:$0xff]  ;;  %v737_v11 = vld [vmem:[%s1770_s2 + $0x288] sm:$0xff] }
  0xf9   :  { %v109_v14 = vmax.f32 %v106_v12, 0.0  ;;  %v702_v12 = vld [vmem:[%s1772_s3 + $0x2] ss:$0 sm:$0xff] }
  0xfb   :  { %957 = vmatmul.mubr.f32.vlgmr.msra.gmra.mrb[0].mxu1 %v109_v14  ;;  %v1255_v14 = vpack.c.bf16 %v737_v11, %v736_v10  ;;  %v769_v11 = vld [vmem:[%s1772_s3 + $0x5] ss:$0 sm:$0xff] }
  0xfc   :  { %1026 = vmatprep.mubr.msk.f32.mxu1 %vm1306_vm0, %v1307_v4  ;;  %1208 = vmatpush3.bf16.msra.mxu1 %v1207_v20  ;;  %v740_v20 = vld [vmem:[%s1770_s2 + $0x2a0] sm:$0xff] }
  0xfd   :  { %1209 = vmatprep.subr.bf16.mxu1 %v1305_v0  ;;  %v1261_v22 = vpack.c.bf16 %v741_v21, %v740_v20 }
 0x100   :  { %1211 = vmatpush3.bf16.msra.mxu1 %v1210_v23  ;;  %v742_v23 = vld [vmem:[%s1770_s2 + $0x2b0] sm:$0xff] }
 0x101   :  { %1212 = vmatprep.subr.bf16.mxu1 %v1305_v0 }
 0x104   :  { %1214 = vmatpush3.bf16.msra.mxu1 %v1213_v26  ;;  %v745_v26 = vld [vmem:[%s1770_s2 + $0x2c8] sm:$0xff] }
 0x105   :  { %1215 = vmatprep.subr.bf16.mxu1 %v1305_v0  ;;  %v1267_v27 = vpack.c.bf16 %v745_v26, %v744_v25 }
 0x108   :  { %1217 = vmatpush3.bf16.msra.mxu1 %v1216_v29  ;;  %v747_v29 = vld [vmem:[%s1770_s2 + $0x2d8] sm:$0xff] }
 0x109   :  { %1218 = vmatprep.subr.bf16.mxu1 %v1305_v0  ;;  %v1270_v30 = vpack.c.bf16 %v747_v29, %v746_v28 }
 0x10c   :  { %1220 = vmatpush3.bf16.msra.mxu1 %v1219_v32  ;;  %v749_v32 = vld [vmem:[%s1770_s2 + $0x2e8] sm:$0xff] }
 0x10d   :  { %1221 = vmatprep.subr.bf16.mxu1 %v1305_v0  ;;  %v1273_v33 = vpack.c.bf16 %v749_v32, %v748_v31 }
 0x110   :  { %1223 = vmatpush3.bf16.msra.mxu1 %v1222_v35 }
 0x111   :  { %1224 = vmatprep.subr.bf16.mxu1 %v1305_v0 }
 0x114   :  { %1226 = vmatpush3.bf16.msra.mxu1 %v1225_v38  ;;  %v1276_v38 = vpack.c.bf16 %v751_v37, %v750_v36 }
 0x115   :  { %1227 = vmatprep.subr.bf16.mxu1 %v1305_v0 }
 0x118   :  { %1229 = vmatpush3.bf16.msra.mxu1 %v1228_v8 }
 0x119   :  { %1254 = vmatprep.subr.bf16.mxu1 %v1305_v0 }
 0x1ce   :  { %v198_v42 = vpop.f32.mrb[0].mxu1 }
 0x1cf   :  { %v199_v43 = vadd.f32 %v685_v39, %v198_v42  ;;  %v958_v44 = vpop.f32.mrb[1].mxu1  ;;  %v753_v39 = vld [vmem:[%s1770_s2 + $0x300] sm:$0xff] }
 0x1d0   :  { %v1279_v42 = vpack.c.bf16 %v754_v40, %v753_v39 }
 0x1d1   :  { %v202_v46 = vmax.f32 %v199_v43, 0.0  ;;  %v756_v43 = vld [vmem:[%s1770_s2 + $0x318] sm:$0xff] }
 0x1d2   :  { %v1282_v44 = vpack.c.bf16 %v756_v43, %v755_v41 }
 0x1d3   :  { %992 = vmatmul.mubr.f32.vlgmr.msra.gmra.mrb[2].mxu0 %v202_v46  ;;  %v758_v46 = vld [vmem:[%s1770_s2 + $0x328] sm:$0xff] }
 0x1d4   :  { %1232 = vmatpush3.bf16.msra.mxu0 %v1231_v45  ;;  %1061 = vmatprep.mubr.msk.f32.mxu0 %vm1306_vm0, %v1307_v4  ;;  %v757_v45 = vld [vmem:[%s1770_s2 + $0x320] sm:$0xff] }
 0x1d5   :  { %1233 = vmatprep.subr.bf16.mxu0 %v1305_v0  ;;  %v1285_v47 = vpack.c.bf16 %v758_v46, %v757_v45 }
 0x1d8   :  { %1235 = vmatpush3.bf16.msra.mxu0 %v1234_v49  ;;  %v760_v49 = vld [vmem:[%s1770_s2 + $0x338] sm:$0xff] }
 0x1d9   :  { %1236 = vmatprep.subr.bf16.mxu0 %v1305_v0  ;;  %v1288_v50 = vpack.c.bf16 %v760_v49, %v759_v48 }
 0x1dc   :  { %1238 = vmatpush3.bf16.msra.mxu0 %v1237_v52  ;;  %v762_v52 = vld [vmem:[%s1770_s2 + $0x348] sm:$0xff] }
 0x1dd   :  { %1239 = vmatprep.subr.bf16.mxu0 %v1305_v0  ;;  %v1291_v53 = vpack.c.bf16 %v762_v52, %v761_v51 }
 0x1e0   :  { %1241 = vmatpush3.bf16.msra.mxu0 %v1240_v55  ;;  %v764_v55 = vld [vmem:[%s1770_s2 + $0x358] sm:$0xff] }
 0x1e1   :  { %1242 = vmatprep.subr.bf16.mxu0 %v1305_v0  ;;  %v1294_v56 = vpack.c.bf16 %v764_v55, %v763_v54 }
 0x1e4   :  { %1244 = vmatpush3.bf16.msra.mxu0 %v1243_v58  ;;  %v766_v58 = vld [vmem:[%s1770_s2 + $0x368] sm:$0xff] }
 0x1e5   :  { %1245 = vmatprep.subr.bf16.mxu0 %v1305_v0  ;;  %v1297_v59 = vpack.c.bf16 %v766_v58, %v765_v57 }
 0x1e8   :  { %1247 = vmatpush3.bf16.msra.mxu0 %v1246_v61  ;;  %v735_v61 = vld [vmem:[%s1772_s3 + $0x3] ss:$0 sm:$0xff] }
 0x1e9   :  { %1248 = vmatprep.subr.bf16.mxu0 %v1305_v0 }
 0x1ec   :  { %1250 = vmatpush3.bf16.msra.mxu0 %v1249_v1 }
 0x1ed   :  { %1251 = vmatprep.subr.bf16.mxu0 %v1305_v0 }
 0x1f0   :  { %1253 = vmatpush3.bf16.msra.mxu0 %v1252_v5  ;;  %v768_v5 = vld [vmem:[%s1770_s2 + $0x378] sm:$0xff] }
 0x1f1   :  { %1278 = vmatprep.subr.bf16.mxu0 %v1305_v0  ;;  %v1300_v6 = vpack.c.bf16 %v768_v5, %v767_v3 }
 0x1f3   :  { %1062 = vmatmul.mubr.f32.vlgmr.msra.gmra.mrb[4].mxu0 %v295_v9 }
 0x1f4   :  { %1131 = vmatprep.mubr.msk.f32.mxu0 %vm1306_vm0, %v1307_v4  ;;  %1280 = vmatpush3.bf16.msra.mxu0 %v1279_v42 }
 0x1f5   :  { %1281 = vmatprep.subr.bf16.mxu0 %v1305_v0 }
 0x1f8   :  { %1283 = vmatpush3.bf16.msra.mxu0 %v1282_v44 }
 0x1f9   :  { %1284 = vmatprep.subr.bf16.mxu0 %v1305_v0 }
 0x1fc   :  { %1286 = vmatpush3.bf16.msra.mxu0 %v1285_v47 }
 0x1fd   :  { %1287 = vmatprep.subr.bf16.mxu0 %v1305_v0 }
 0x200   :  { %1289 = vmatpush3.bf16.msra.mxu0 %v1288_v50 }
 0x201   :  { %1290 = vmatprep.subr.bf16.mxu0 %v1305_v0 }
 0x204   :  { %1292 = vmatpush3.bf16.msra.mxu0 %v1291_v53 }
 0x205   :  { %1293 = vmatprep.subr.bf16.mxu0 %v1305_v0 }
 0x208   :  { %1295 = vmatpush3.bf16.msra.mxu0 %v1294_v56 }
 0x209   :  { %1296 = vmatprep.subr.bf16.mxu0 %v1305_v0 }
 0x20c   :  { %1298 = vmatpush3.bf16.msra.mxu0 %v1297_v59 }
 0x20d   :  { %1299 = vmatprep.subr.bf16.mxu0 %v1305_v0 }
 0x210   :  { %1301 = vmatpush3.bf16.msra.mxu0 %v1300_v6 }
 0x2a6   :  { %v291_v13 = vpop.f32.mrb[2].mxu0 }
 0x2a7   :  { %v1648_v15 = vadd.f32 %v702_v12, %v291_v13  ;;  %v993_v16 = vpop.f32.mrb[3].mxu0 }
 0x2a9   :  { %1027 = vmatmul.mubr.f32.vlgmr.msra.gmra.mrb[2].mxu1 %v1648_v15 }
 0x2aa   :  { %1256 = vmatpush3.bf16.msra.mxu1 %v1255_v14  ;;  %1096 = vmatprep.mubr.msk.f32.mxu1 %vm1306_vm0, %v1307_v4  ;;  %v743_v4 = vld [vmem:[%s1770_s2 + $0x2b8] sm:$0xff] }
 0x2ab   :  { %1257 = vmatprep.subr.bf16.mxu1 %v1305_v0  ;;  %v1264_v24 = vpack.c.bf16 %v743_v4, %v742_v23 }
 0x2ae   :  { %1259 = vmatpush3.bf16.msra.mxu1 %v1258_v19 }
 0x2af   :  { %1260 = vmatprep.subr.bf16.mxu1 %v1305_v0 }
 0x2b2   :  { %1262 = vmatpush3.bf16.msra.mxu1 %v1261_v22 }
 0x2b3   :  { %1263 = vmatprep.subr.bf16.mxu1 %v1305_v0 }
 0x2b6   :  { %1265 = vmatpush3.bf16.msra.mxu1 %v1264_v24 }
 0x2b7   :  { %1266 = vmatprep.subr.bf16.mxu1 %v1305_v0 }
 0x2ba   :  { %1268 = vmatpush3.bf16.msra.mxu1 %v1267_v27 }
 0x2bb   :  { %1269 = vmatprep.subr.bf16.mxu1 %v1305_v0 }
 0x2be   :  { %1271 = vmatpush3.bf16.msra.mxu1 %v1270_v30 }
 0x2bf   :  { %1272 = vmatprep.subr.bf16.mxu1 %v1305_v0 }
 0x2c2   :  { %1274 = vmatpush3.bf16.msra.mxu1 %v1273_v33 }
 0x2c3   :  { %1275 = vmatprep.subr.bf16.mxu1 %v1305_v0  ;;  %v752_v0 = vld [vmem:[%s1772_s3 + $0x4] ss:$0 sm:$0xff] }
 0x2c6   :  { %v466_v34 = vpop.f32.mrb[4].mxu0  ;;  %1277 = vmatpush3.bf16.msra.mxu1 %v1276_v38 }
 0x2c7   :  { %v1063_v35 = vpop.f32.mrb[5].mxu0 }
 0x37c   :  { %v396_v60 = vpop.f32.mrb[2].mxu1 }
 0x37d   :  { %v467_v62 = vadd.f32 %v466_v34, %v396_v60  ;;  %v1028_v63 = vpop.f32.mrb[3].mxu1 }
 0x37f   :  { %v475_v1 = vadd.f32 %v735_v61, %v467_v62 }
 0x381   :  { %v476_v2 = vmax.f32 %v475_v1, 0.0 }
 0x383   :  { %1097 = vmatmul.mubr.f32.vlgmr.msra.gmra.mrb[4].mxu1 %v476_v2 }
 0x456   :  { %v565_v7 = vpop.f32.mrb[4].mxu1 }
 0x457   :  { %v566_v8 = vadd.f32 %v752_v0, %v565_v7  ;;  %v1098_v9 = vpop.f32.mrb[5].mxu1 }
 0x459   :  { %v569_v10 = vmax.f32 %v566_v8, 0.0 }
 0x45b   :  { %1132 = vmatmul.mubr.f32.vlgmr.msra.gmra.mrb[6].mxu0 %v569_v10 }
 0x52e   :  { %v658_v12 = vpop.f32.mrb[6].mxu0 }
 0x52f   :  { %v659_v13 = vadd.f32 %v769_v11, %v658_v12  ;;  %v1133_v14 = vpop.f32.mrb[7].mxu0 }
 0x531   :  { %v662_v16 = vadd.f32 %v659_v13, %v1648_v15 }
 0x533   :  { %663 = vst [vmem:[%s1774_s4] sm:$0xff] %v662_v16 }

</bundles_post_ra>
